<compile_context>
chip_gen: v7x
topology: tpu7x:2x2x1
jax: 0.10.0
libtpu: 0.0.40
codegen_flags: <defaults>
</compile_context>

<pallas_src>
import functools

import jax
import jax.numpy as jnp
from jax.experimental import pallas as pl
from jax.experimental.pallas import tpu as pltpu

_LANE = 128          # lane width: hidden feature dims padded to a multiple of this
_SUBLANE = 8         # sublane granularity for the batch tile
_MAX_TILE_B = 2048   # ~1-3 MiB working set at 2048 rows -> well under scoped VMEM


def _round_up(x, m):
    return ((x + m - 1) // m) * m


def _mlp_kernel(x_ref, w1_ref, b1_ref, w2_ref, b2_ref, w3_ref, b3_ref, o_ref):
    # f32 -> bf16 cast done here (VPU work hidden under the input DMA) so the
    # wrapper never makes a separate XLA cast pass over HBM.
    x = x_ref[...].astype(w1_ref.dtype)                 # (TILE_B, in_dims) bf16

    # fc1 + ReLU  (bf16 MXU, f32 accumulate / bias add / ReLU)
    h1 = jnp.dot(x, w1_ref[...], preferred_element_type=jnp.float32) + b1_ref[...]
    h1 = jnp.maximum(h1, 0.0).astype(w2_ref.dtype)

    # fc2 + ReLU
    h2 = jnp.dot(h1, w2_ref[...], preferred_element_type=jnp.float32) + b2_ref[...]
    h2 = jnp.maximum(h2, 0.0).astype(w3_ref.dtype)

    # pi head (no activation). Output kept at its true n_actions width: the
    # per-step HBM writeback is tile_b x n_actions x f32 (~8 KiB at 512x4)
    # instead of a lane-padded tile_b x 128 x f32 slab.
    pi = jnp.dot(h2, w3_ref[...], preferred_element_type=jnp.float32) + b3_ref[...]
    o_ref[...] = pi.astype(o_ref.dtype)


def net_forward(state, params, n_actions):
    """Pallas forward pass equivalent to Net.forward(state) -> (B, n_actions)."""
    w1, b1 = params["w1"], params["b1"]
    w2, b2 = params["w2"], params["b2"]
    w3, b3 = params["w3"], params["b3"]

    batch, in_dims = state.shape
    assert in_dims == w1.shape[0], "state feature dim must match w1 fan_in"
    n_out = w3.shape[1]
    assert n_out == n_actions

    # Batch tiling: guarantee an even grid >= 2 whenever there is enough work so
    # both v7x TensorCores are busy (harmless on single-TC v5e/v6e). Deriving
    # tile_b from cdiv(batch, num_tiles) bounds padded rows to < _SUBLANE/tile.
    num_tiles = max(pl.cdiv(batch, _MAX_TILE_B), 1)
    if batch > _SUBLANE:
        num_tiles = max(num_tiles, 2)
    if num_tiles > 1 and num_tiles % 2:
        num_tiles += 1
    tile_b = _round_up(pl.cdiv(batch, num_tiles), _SUBLANE)
    padded_b = num_tiles * tile_b

    x = state
    if padded_b != batch:
        # Small contiguous row pad (bounded by ~8*num_tiles rows); feature dim
        # is left untouched.
        x = jnp.pad(x, ((0, padded_b - batch), (0, 0)))

    def resident(arr):
        # Full-extent block, constant index_map -> fetched once, stays resident
        # in VMEM across all grid steps.
        return pl.BlockSpec(arr.shape, lambda i: (0, 0))

    out = pl.pallas_call(
        _mlp_kernel,
        out_shape=jax.ShapeDtypeStruct((padded_b, n_out), jnp.float32),
        grid=(num_tiles,),
        in_specs=[
            # state: batch-tiled at its true (unpadded) feature width — legal
            # because the last block dim equals the full array dim.
            pl.BlockSpec((tile_b, in_dims), lambda i: (i, 0)),
            resident(w1), resident(b1),
            resident(w2), resident(b2),
            resident(w3), resident(b3),
        ],
        out_specs=pl.BlockSpec((tile_b, n_out), lambda i: (i, 0)),
        compiler_params=pltpu.CompilerParams(
            dimension_semantics=("parallel",),          # megacore split on v7x
        ),
    )(x, w1, b1, w2, b2, w3, b3)

    return out if padded_b == batch else out[:batch]


def init_params(key, input_dims, fc1_dims, fc2_dims, n_actions,
                param_dtype=jnp.bfloat16):
    """nn.Linear-style U(-1/sqrt(fan_in), 1/sqrt(fan_in)) init.

    Weights are stored pre-transposed as (in, out). Hidden dims are zero-padded
    to multiples of 128 (padding contributes exactly 0 through ReLU, so the
    semantics match the unpadded module); the input dim and n_actions keep
    their true sizes so no HBM padding of activations/outputs is ever needed.
    Weights are stored in `param_dtype` (bf16); biases stay (1, out) float32.
    """
    def linear(k, fan_in, fan_out, pad_in, pad_out):
        kw, kb = jax.random.split(k)
        bound = 1.0 / jnp.sqrt(jnp.float32(fan_in))
        w = jax.random.uniform(kw, (fan_in, fan_out), jnp.float32, -bound, bound)
        b = jax.random.uniform(kb, (1, fan_out), jnp.float32, -bound, bound)
        w_p = jnp.zeros((pad_in, pad_out), jnp.float32).at[:fan_in, :fan_out].set(w)
        b_p = jnp.zeros((1, pad_out), jnp.float32).at[:, :fan_out].set(b)
        return w_p.astype(param_dtype), b_p

    d_h1 = _round_up(fc1_dims, _LANE)
    d_h2 = _round_up(fc2_dims, _LANE)

    k1, k2, k3 = jax.random.split(key, 3)
    w1, b1 = linear(k1, input_dims, fc1_dims, input_dims, d_h1)   # true fan_in rows
    w2, b2 = linear(k2, fc1_dims, fc2_dims, d_h1, d_h2)
    w3, b3 = linear(k3, fc2_dims, n_actions, d_h2, n_actions)     # true action cols
    return {"w1": w1, "b1": b1, "w2": w2, "b2": b2, "w3": w3, "b3": b3}


def reference_forward(state, params, n_actions):
    """Pure-JAX mirror of the kernel numerics (bf16 weights/acts, f32 accum)."""
    w1, b1, w2, b2, w3, b3 = (params["w1"], params["b1"], params["w2"],
                              params["b2"], params["w3"], params["b3"])
    x = state.astype(w1.dtype)
    h1 = jnp.maximum(jnp.dot(x, w1, preferred_element_type=jnp.float32) + b1, 0.0)
    h2 = jnp.maximum(
        jnp.dot(h1.astype(w2.dtype), w2, preferred_element_type=jnp.float32) + b2, 0.0)
    pi = jnp.dot(h2.astype(w3.dtype), w3, preferred_element_type=jnp.float32) + b3
    return pi[:, :n_actions]


if __name__ == "__main__":
    # Small shapes consistent with Net(alpha, input_dims, fc1_dims, fc2_dims, n_actions).
    # batch=16 exercises the multi-tile (grid=(2,), "parallel") path.
    # TODO(synk): the Adam optimizer and .to(device) placement in the PyTorch module
    # are training/host-state concerns, not part of the forward pass; not ported.
    batch, input_dims, fc1_dims, fc2_dims, n_actions = 16, 16, 32, 32, 4

    key = jax.random.PRNGKey(0)
    k_params, k_state = jax.random.split(key)

    params = init_params(k_params, input_dims, fc1_dims, fc2_dims, n_actions)
    state = jax.random.normal(k_state, (batch, input_dims), jnp.float32)

    forward = jax.jit(functools.partial(net_forward, n_actions=n_actions))
    pi = jax.block_until_ready(forward(state, params))

    ref = reference_forward(state, params, n_actions)
    assert pi.shape == (batch, n_actions)
    assert jnp.allclose(pi, ref, atol=1e-3, rtol=1e-3), float(jnp.max(jnp.abs(pi - ref)))

    print("KERNEL_OK")
</pallas_src>

<mosaic_0001>
module attributes {stable_mosaic.version = 11 : i64} {
  func.func @_mlp_kernel(%arg0: i32, %arg1: memref<8x16xf32, #tpu.memory_space<vmem>>, %arg2: memref<16x128xbf16, #tpu.memory_space<vmem>>, %arg3: memref<1x128xf32, #tpu.memory_space<vmem>>, %arg4: memref<128x128xbf16, #tpu.memory_space<vmem>>, %arg5: memref<1x128xf32, #tpu.memory_space<vmem>>, %arg6: memref<128x4xbf16, #tpu.memory_space<vmem>>, %arg7: memref<1x4xf32, #tpu.memory_space<vmem>>, %arg8: memref<8x4xf32, #tpu.memory_space<vmem>>) attributes {dimension_semantics = [#tpu.dimension_semantics<parallel>], iteration_bounds = array<i64: 2>, scalar_prefetch = 0 : i64, scratch_operands = 0 : i64, tpu.core_type = #tpu.core_type<tc>, window_params = [{transform_indices = @transform_0, window_bounds = array<i64: 8, 16>}, {pipeline_mode = #tpu.pipeline_mode<synchronous>, transform_indices = @transform_1, window_bounds = array<i64: 16, 128>}, {pipeline_mode = #tpu.pipeline_mode<synchronous>, transform_indices = @transform_2, window_bounds = array<i64: 1, 128>}, {pipeline_mode = #tpu.pipeline_mode<synchronous>, transform_indices = @transform_3, window_bounds = array<i64: 128, 128>}, {pipeline_mode = #tpu.pipeline_mode<synchronous>, transform_indices = @transform_4, window_bounds = array<i64: 1, 128>}, {pipeline_mode = #tpu.pipeline_mode<synchronous>, transform_indices = @transform_5, window_bounds = array<i64: 128, 4>}, {pipeline_mode = #tpu.pipeline_mode<synchronous>, transform_indices = @transform_6, window_bounds = array<i64: 1, 4>}, {transform_indices = @transform_7, window_bounds = array<i64: 8, 4>}]} {
    %c0 = arith.constant 0 : index
    %c0_0 = arith.constant 0 : index
    %0 = vector.load %arg1[%c0, %c0_0] : memref<8x16xf32, #tpu.memory_space<vmem>>, vector<8x16xf32>
    %1 = arith.truncf %0 : vector<8x16xf32> to vector<8x16xbf16>
    %c0_1 = arith.constant 0 : index
    %c0_2 = arith.constant 0 : index
    %2 = vector.load %arg2[%c0_1, %c0_2] : memref<16x128xbf16, #tpu.memory_space<vmem>>, vector<16x128xbf16>
    %cst = arith.constant dense<0.000000e+00> : vector<8x128xf32>
    %3 = tpu.matmul %1, %2, %cst {dimension_numbers = #tpu.dot_dimension_numbers<[1], [0], [0], [1], [0, 0, 1, 1], [], []>} : vector<8x16xbf16>, vector<16x128xbf16>, vector<8x128xf32> -> vector<8x128xf32>
    %c0_3 = arith.constant 0 : index
    %c0_4 = arith.constant 0 : index
    %4 = vector.load %arg3[%c0_3, %c0_4] : memref<1x128xf32, #tpu.memory_space<vmem>>, vector<1x128xf32>
    %5 = vector.broadcast %4 : vector<1x128xf32> to vector<8x128xf32>
    %6 = arith.addf %3, %5 : vector<8x128xf32>
    %cst_5 = arith.constant 0.000000e+00 : f32
    %7 = vector.broadcast %cst_5 : f32 to vector<8x128xf32>
    %8 = arith.maximumf %6, %7 : vector<8x128xf32>
    %9 = arith.truncf %8 : vector<8x128xf32> to vector<8x128xbf16>
    %c0_6 = arith.constant 0 : index
    %c0_7 = arith.constant 0 : index
    %10 = vector.load %arg4[%c0_6, %c0_7] : memref<128x128xbf16, #tpu.memory_space<vmem>>, vector<128x128xbf16>
    %cst_8 = arith.constant dense<0.000000e+00> : vector<8x128xf32>
    %11 = tpu.matmul %9, %10, %cst_8 {dimension_numbers = #tpu.dot_dimension_numbers<[1], [0], [0], [1], [0, 0, 1, 1], [], []>} : vector<8x128xbf16>, vector<128x128xbf16>, vector<8x128xf32> -> vector<8x128xf32>
    %c0_9 = arith.constant 0 : index
    %c0_10 = arith.constant 0 : index
    %12 = vector.load %arg5[%c0_9, %c0_10] : memref<1x128xf32, #tpu.memory_space<vmem>>, vector<1x128xf32>
    %13 = vector.broadcast %12 : vector<1x128xf32> to vector<8x128xf32>
    %14 = arith.addf %11, %13 : vector<8x128xf32>
    %cst_11 = arith.constant 0.000000e+00 : f32
    %15 = vector.broadcast %cst_11 : f32 to vector<8x128xf32>
    %16 = arith.maximumf %14, %15 : vector<8x128xf32>
    %17 = arith.truncf %16 : vector<8x128xf32> to vector<8x128xbf16>
    %c0_12 = arith.constant 0 : index
    %c0_13 = arith.constant 0 : index
    %18 = vector.load %arg6[%c0_12, %c0_13] : memref<128x4xbf16, #tpu.memory_space<vmem>>, vector<128x4xbf16>
    %cst_14 = arith.constant dense<0.000000e+00> : vector<8x4xf32>
    %19 = tpu.matmul %17, %18, %cst_14 {dimension_numbers = #tpu.dot_dimension_numbers<[1], [0], [0], [1], [0, 0, 1, 1], [], []>} : vector<8x128xbf16>, vector<128x4xbf16>, vector<8x4xf32> -> vector<8x4xf32>
    %c0_15 = arith.constant 0 : index
    %c0_16 = arith.constant 0 : index
    %20 = vector.load %arg7[%c0_15, %c0_16] : memref<1x4xf32, #tpu.memory_space<vmem>>, vector<1x4xf32>
    %21 = vector.broadcast %20 : vector<1x4xf32> to vector<8x4xf32>
    %22 = arith.addf %19, %21 : vector<8x4xf32>
    %c0_17 = arith.constant 0 : index
    %c0_18 = arith.constant 0 : index
    %23 = vector.load %arg8[%c0_17, %c0_18] : memref<8x4xf32, #tpu.memory_space<vmem>>, vector<8x4xf32>
    tpu.vector_store %arg8[%c0_17, %c0_18], %22 {strides = array<i32>} : memref<8x4xf32, #tpu.memory_space<vmem>>, vector<8x4xf32>,
    return
  }
  func.func @transform_0(%arg0: i32) -> (i32, i32) {
    %c0_i32 = arith.constant 0 : i32
    %c0_i32_0 = arith.constant 0 : i32
    return %arg0, %c0_i32 : i32, i32
  }
  func.func @transform_1(%arg0: i32) -> (i32, i32) {
    %c0_i32 = arith.constant 0 : i32
    %c0_i32_0 = arith.constant 0 : i32
    %c0_i32_1 = arith.constant 0 : i32
    return %c0_i32, %c0_i32_0 : i32, i32
  }
  func.func @transform_2(%arg0: i32) -> (i32, i32) {
    %c0_i32 = arith.constant 0 : i32
    %c0_i32_0 = arith.constant 0 : i32
    %c0_i32_1 = arith.constant 0 : i32
    return %c0_i32, %c0_i32_0 : i32, i32
  }
  func.func @transform_3(%arg0: i32) -> (i32, i32) {
    %c0_i32 = arith.constant 0 : i32
    %c0_i32_0 = arith.constant 0 : i32
    %c0_i32_1 = arith.constant 0 : i32
    return %c0_i32, %c0_i32_0 : i32, i32
  }
  func.func @transform_4(%arg0: i32) -> (i32, i32) {
    %c0_i32 = arith.constant 0 : i32
    %c0_i32_0 = arith.constant 0 : i32
    %c0_i32_1 = arith.constant 0 : i32
    return %c0_i32, %c0_i32_0 : i32, i32
  }
  func.func @transform_5(%arg0: i32) -> (i32, i32) {
    %c0_i32 = arith.constant 0 : i32
    %c0_i32_0 = arith.constant 0 : i32
    %c0_i32_1 = arith.constant 0 : i32
    return %c0_i32, %c0_i32_0 : i32, i32
  }
  func.func @transform_6(%arg0: i32) -> (i32, i32) {
    %c0_i32 = arith.constant 0 : i32
    %c0_i32_0 = arith.constant 0 : i32
    %c0_i32_1 = arith.constant 0 : i32
    return %c0_i32, %c0_i32_0 : i32, i32
  }
  func.func @transform_7(%arg0: i32) -> (i32, i32) {
    %c0_i32 = arith.constant 0 : i32
    %c0_i32_0 = arith.constant 0 : i32
    return %arg0, %c0_i32 : i32, i32
  }
}

</mosaic_0001>

<bundles_post_ra>
// kernel: net_forward.1
= control target key start
LH: loop header
LB: loop body
LE: loop exit
PB: predicated region body
PF: predicated region fallthrough
CT: control target
= control target key end

     0   :  { %12 = vsyncpa [#allocation3], 0  ;;  %s867_s24 = smov 0   ;;  %s1010_s0 = inlined_call_operand.vmem [shape: f32[16,16], index: 0, kind: input, shape index: {}]   ;;  %s1011_s1 = inlined_call_operand.hbm [shape: bf16[16,128], index: 1, kind: input, shape index: {}]   ;;  %s1012_s2 = inlined_call_operand.vmem [shape: f32[1,128], index: 2, kind: input, shape index: {}]   ;;  %s1013_s3 = inlined_call_operand.vmem [shape: bf16[128,128], index: 3, kind: input, shape index: {}]   ;;  %s1014_s4 = inlined_call_operand.vmem [shape: f32[1,128], index: 4, kind: input, shape index: {}]   ;;  %s1015_s5 = inlined_call_operand.vmem [shape: bf16[128,4], index: 5, kind: input, shape index: {}]   ;;  %s1016_s6 = inlined_call_operand.vmem [shape: f32[1,4], index: 6, kind: input, shape index: {}]   ;;  %s1017_s7 = inlined_call_operand.vmem [shape: f32[16,4], index: 7, kind: output, shape index: {}]  }
   0x1 LB: > { %s873_s25 = sadd.s32 4294967295, %s820_s24   ;;  %p646_p0 = scmp.ge.s32.totalorder %s820_s24, 1  ;;  %s820_s24 = sphi %s867_s24, %s18_s24  }
   0x2   : > { %p201_p1 = scmp.lt.s32.totalorder %s820_s24, 3  ;;  %s822_s26 = smov [#allocation2]  }
   0x3   : > { %s213_s27 = sshll.u32 %s822_s26, 4  ;;  %p1018_p3 = scmp.eq.s32.totalorder %s873_s25, 0  ;;  %s214_s27 = int_to_ptr.vmem [resolvable:$true] %s213_s27 }
   0x4   : > { %p877_p2 = pnand %p646_p0, %p201_p1  ;;  %s782_s9 = scalar_lea.hbm %s1011_s1, 128 }
   0x5   : > { %p783_p6 = scmp.ne.s32.totalorder %s1011_s1, %s782_s9  ;;  %p789_p10 = scmp.lt.u32.totalorder %s782_s9, %s1011_s1 }
   0x6   : > { %s1020_s28 = scalar_select %p877_p2, 1, 0 }
   0x7   : > { %p746_p4 = pneg %p877_p2 }
   0x9   : > { %p886_p5 = pnand %p1018_p3, %p746_p4 }
   0xb   : > { %p784_p7 = pneg %p886_p5 }
   0xd   : > { %p785_p8 = pnand %p784_p7, %p783_p6 }
   0xf   : > { %p786_p9 = pneg %p785_p8 }
  0x11   : > { %p791_p11 = pnand %p789_p10, %p786_p9 }
  0x13   : > { %794 = shalt.err (!%p791_p11)
}
  0x14   : > { %s795_s14 = scalar_lea.vmem %s214_s27, 128  ;;  %p803_p1 = scmp.lt.s32.totalorder %s214_s27, %s214_s27 }
  0x15   : > { %p796_p12 = scmp.ne.s32.totalorder %s214_s27, %s795_s14  ;;  %p804_p4 = scmp.lt.s32.totalorder %s795_s14, %s795_s14 }
  0x17   : > { %p798_p13 = pnand %p796_p12, %p784_p7  ;;  %p805_p3 = por %p804_p4, %p803_p1 }
  0x19   : > { %p799_p0 = pneg %p798_p13 }
  0x1b   : > { %p806_p2 = pnand %p805_p3, %p799_p0 }
  0x1d   : > { %809 = shalt.err (!%p806_p2)
}
  0x1e   : > { %s823_s15 = smov 64   ;;  %s824_s16 = smov 4  }
  0x1f   : > { %749 = dma.hbm_to_vmem [thread:$0]  (!%p886_p5), %s1011_s1, 128, %s214_s27, [#allocation3], %s823_s15, %s823_s15, %s824_s16  }
  0x20   : > { %p1022_p6 = scmp.ne.s32.totalorder %s1020_s28, 0 }
  0x21   : > { %p1023_p8 = scmp.eq.s32.totalorder (!%p1022_p6), %s873_s25, 0 }
  0x22   : > { %251 = sbr.rel (%p1022_p6) target bundleno = 701 (0x2bd), region = 48 }
  0x29   : > { %815 = dma.done.wait (%p1023_p8), [#allocation3], 128   ;;  %p1024_p7 = pmov %p1023_p8 }
  0x2a   : > { %p281_p2 = scmp.lt.s32.totalorder %s873_s25, 1  ;;  %v825_v0 = vmov 0.0   ;;  %vm826_vm0 = vmmov 0   ;;  %v765_v1 = vld [vmem:[#allocation2] sm:$0xff]   ;;  %vm307_vm1 = vcmask 130048   ;;  %v767_v5 = vld [vmem:[%s1013_s3 + $0x8] sm:$0xff]  }
  0x2b   : > { %817 = vsyncadd (%p1024_p7), [#allocation3], 4294967168  ;;  %696 = vmatprep.subr.bf16.mxu0 %v825_v0  ;;  %698 = vmatprep.mubr.msk.bf16.mxu0 %vm826_vm0, %v825_v0  ;;  %v766_v4 = vld [vmem:[%s1013_s3] sm:$0xff]   ;;  %v768_v6 = vld [vmem:[%s1013_s3 + $0x10] sm:$0xff]   ;;  %vm577_vm2 = vcmask 31744  }
  0x2c   : > { %s1026_s25 = smov (!%p281_p2, %s873_s25), 1  ;;  %702 = vmatprep.subr.bf16.mxu1 %v825_v0  ;;  %718 = vmatprep.mubr.msk.bf16.mxu1 %vm826_vm0, %v825_v0  ;;  %v769_v7 = vld [vmem:[%s1013_s3 + $0x18] sm:$0xff]   ;;  %v770_v8 = vld [vmem:[%s1013_s3 + $0x20] sm:$0xff]   ;;  %v771_v9 = vld [vmem:[%s1013_s3 + $0x28] sm:$0xff]  }
  0x2d   : > { %s651_s19 = sshll.u32 %s1026_s25, 3  ;;  %697 = vmatpush3.bf16.msra.mxu0 %v765_v1  ;;  %703 = vmatpush3.bf16.msra.mxu1 %v766_v4  ;;  %v772_v10 = vld [vmem:[%s1013_s3 + $0x30] sm:$0xff]   ;;  %v773_v11 = vld [vmem:[%s1013_s3 + $0x38] sm:$0xff]   ;;  %v774_v12 = vld [vmem:[%s1015_s5] sm:$0xff]  }
  0x2e   : > { %s284_s22 = scalar_lea.vmem %s1010_s0, %s651_s19  ;;  %722 = vmatprep.subr.bf16.mxu0 %v825_v0  ;;  %704 = vmatprep.subr.bf16.mxu1 %v825_v0  ;;  %v775_v13 = vld [vmem:[%s1015_s5 + $0x8] sm:$0xff]   ;;  %v776_v14 = vld [vmem:[%s1015_s5 + $0x10] sm:$0xff]   ;;  %v777_v15 = vld [vmem:[%s1015_s5 + $0x18] sm:$0xff]   ;;  %s288_s23 = scalar_lea.vmem %s1017_s7, %s651_s19 }
  0x2f   : > { %v290_v2 = vld [vmem:[%s284_s22] sm:$0xff]  ;;  %v779_v17 = vld [vmem:[%s1015_s5 + $0x28] sm:$0xff]   ;;  %v780_v26 = vld [vmem:[%s1015_s5 + $0x30] sm:$0xff]  }
  0x30   : > { %v291_v3 = vpack.c.bf16 %v290_v2, %v290_v2  ;;  %v778_v16 = vld [vmem:[%s1015_s5 + $0x20] sm:$0xff]   ;;  %v781_v27 = vld [vmem:[%s1015_s5 + $0x38] sm:$0xff]  }
  0x31   : > { %705 = vmatpush3.bf16.msra.mxu1 %v767_v5  ;;  %v653_v18 = vld [vmem:[%s1012_s2] ss:$0 sm:$0xff] }
  0x32   : > { %699 = vmatmul.mubr.msk.bf16.vlgmr.msra.gmra.mrb[0].mxu0 %vm307_vm1, %v291_v3  ;;  %706 = vmatprep.subr.bf16.mxu1 %v825_v0  ;;  %v656_v28 = vld [vmem:[%s1014_s4] ss:$0 sm:$0xff] }
  0x33   : > { %738 = vmatprep.mubr.msk.bf16.mxu0 %vm826_vm0, %v825_v0  ;;  %723 = vmatpush3.bf16.msra.mxu0 %v774_v12  ;;  %v665_v36 = vld [vmem:[%s1016_s6] ss:$0 sm:$0xff] }
  0x34   : > { %724 = vmatprep.subr.bf16.mxu0 %v825_v0 }
  0x35   : > { %707 = vmatpush3.bf16.msra.mxu1 %v768_v6 }
  0x36   : > { %708 = vmatprep.subr.bf16.mxu1 %v825_v0 }
  0x37   : > { %725 = vmatpush3.bf16.msra.mxu0 %v775_v13 }
  0x38   : > { %726 = vmatprep.subr.bf16.mxu0 %v825_v0 }
  0x39   : > { %709 = vmatpush3.bf16.msra.mxu1 %v769_v7 }
  0x3a   : > { %710 = vmatprep.subr.bf16.mxu1 %v825_v0 }
  0x3b   : > { %727 = vmatpush3.bf16.msra.mxu0 %v776_v14 }
  0x3c   : > { %728 = vmatprep.subr.bf16.mxu0 %v825_v0 }
  0x3d   : > { %711 = vmatpush3.bf16.msra.mxu1 %v770_v8 }
  0x3e   : > { %712 = vmatprep.subr.bf16.mxu1 %v825_v0 }
  0x3f   : > { %729 = vmatpush3.bf16.msra.mxu0 %v777_v15 }
  0x40   : > { %730 = vmatprep.subr.bf16.mxu0 %v825_v0 }
  0x41   : > { %713 = vmatpush3.bf16.msra.mxu1 %v771_v9 }
  0x42   : > { %714 = vmatprep.subr.bf16.mxu1 %v825_v0 }
  0x43   : > { %731 = vmatpush3.bf16.msra.mxu0 %v778_v16 }
  0x44   : > { %732 = vmatprep.subr.bf16.mxu0 %v825_v0 }
  0x45   : > { %715 = vmatpush3.bf16.msra.mxu1 %v772_v10 }
  0x46   : > { %716 = vmatprep.subr.bf16.mxu1 %v825_v0 }
  0x47   : > { %733 = vmatpush3.bf16.msra.mxu0 %v779_v17 }
  0x48   : > { %734 = vmatprep.subr.bf16.mxu0 %v825_v0 }
  0x49   : > { %717 = vmatpush3.bf16.msra.mxu1 %v773_v11 }
  0x4b   : > { %735 = vmatpush3.bf16.msra.mxu0 %v780_v26 }
  0x4c   : > { %736 = vmatprep.subr.bf16.mxu0 %v825_v0 }
  0x4f   : > { %737 = vmatpush3.bf16.msra.mxu0 %v781_v27 }
 0x105   : > { %v345_v19 = vpop.f32.mrb[0].mxu0 }
 0x106   : > { %v346_v20 = vadd.f32 %v653_v18, %v345_v19  ;;  %v700_v21 = vpop.f32.mrb[1].mxu0 }
 0x107   : > { %v348_v22 = vpop.f32.mrb[2].mxu0 }
 0x108   : > { %v351_v23 = vmax.f32 %v346_v20, 0.0  ;;  %v701_v24 = vpop.f32.mrb[3].mxu0 }
 0x10a   : > { %v352_v25 = vpack.c.bf16 %v351_v23, %v351_v23 }
 0x10c   : > { %719 = vmatmul.mubr.bf16.vlgmr.msra.gmra.mrb[0].mxu1 %v352_v25 }
 0x1df   : > { %v458_v29 = vpop.f32.mrb[0].mxu1 }
 0x1e0   : > { %v459_v30 = vadd.f32 %v656_v28, %v458_v29  ;;  %v720_v31 = vpop.f32.mrb[1].mxu1 }
 0x1e1   : > { %v461_v32 = vpop.f32.mrb[2].mxu1 }
 0x1e2   : > { %v464_v33 = vmax.f32 %v459_v30, 0.0  ;;  %v721_v34 = vpop.f32.mrb[3].mxu1 }
 0x1e4   : > { %v465_v35 = vpack.c.bf16 %v464_v33, %v464_v33 }
 0x1e6   : > { %739 = vmatmul.mubr.bf16.vlgmr.msra.gmra.mrb[4].mxu0 %v465_v35 }
 0x2b9   : > { %v571_v37 = vpop.f32.mrb[4].mxu0 }
 0x2ba   : > { %v572_v38 = vadd.f32 %v665_v36, %v571_v37  ;;  %v740_v39 = vpop.f32.mrb[5].mxu0 }
 0x2bb   : > { %v574_v40 = vpop.f32.mrb[6].mxu0 }
 0x2bc   : > { %578 = vst.msk [vmem:[%s288_s23] sm:$0xff] %vm577_vm2, %v572_v38  ;;  %v741_v41 = vpop.f32.mrb[7].mxu0 }
 0x2bd PF: > { %s18_s24 = sadd.s32 1, %s820_s24  }
 0x2be   : > { %p15_p3 = scmp.ge.s32.totalorder %s18_s24, 4  }
 0x2c0   :  { %17 = sbr.rel (!%p15_p3) target bundleno = 1 (0x1), region = 83 }
 0x2c7   :  { %598 = vsyncpa [#allocation3], 1 }
 0x2c8   :  { %600 = vsyncpa [#allocation3 + $0x1], 1 }

</bundles_post_ra>
